<compile_context>
chip_gen: v5e
topology: v5e:2x2
jax: 0.10.0
libtpu: 0.0.40
codegen_flags: <defaults>
</compile_context>

<pallas_src>
import jax
import jax.numpy as jnp
from jax.experimental import pallas as pl
from jax.experimental.pallas import tpu as pltpu


def _linear_single_kernel(x_ref, wt_ref, b_ref, o_ref):
    # One grid step: whole (B, D) x and (D, N) W.T are resident in VMEM.
    o_ref[...] = (
        jnp.dot(x_ref[...], wt_ref[...], preferred_element_type=jnp.float32)
        + b_ref[...]
    ).astype(o_ref.dtype)


def _linear_ktiled_kernel(x_ref, wt_ref, b_ref, o_ref):
    # Reduction over K; the output block is resident across the K axis
    # (constant output index_map) so accumulate straight into o_ref —
    # no scratch accumulator, no final copy. Bias seeds the accumulation.
    k = pl.program_id(0)

    @pl.when(k == 0)
    def _():
        o_ref[...] = jnp.broadcast_to(b_ref[...], o_ref.shape).astype(o_ref.dtype)

    o_ref[...] += jnp.dot(
        x_ref[...], wt_ref[...], preferred_element_type=jnp.float32
    )


def logistic_model_forward(x_nchw, weight, bias, *, max_tk=8192,
                           vmem_budget_bytes=48 * 1024 * 1024):
    """Equivalent of LogisticModel.forward.

    x_nchw: (B, C, H, W) float32
    weight: (out_features, in_features) float32   (torch nn.Linear convention)
    bias:   (out_features,) float32
    returns (B, out_features) float32
    """
    B = int(x_nchw.shape[0])
    D = 1
    for d in x_nchw.shape[1:]:
        D *= int(d)
    N, Dw = weight.shape
    assert Dw == D, f"weight in_features {Dw} != flattened input dim {D}"

    # Flatten exactly like torch: x.view(B, -1). No padded copy of x.
    x2d = x_nchw.reshape(B, D).astype(jnp.float32)
    wt = weight.T.astype(jnp.float32)          # (D, N) — NOT padded to 128 lanes
    b2d = bias.reshape(1, N).astype(jnp.float32)

    # Bytes if everything is resident in VMEM at once (inputs double-buffered).
    full_bytes = 4 * (2 * B * D + 2 * D * N + 2 * N + B * N)
    if full_bytes <= vmem_budget_bytes:
        # Fast path: one grid step, no accumulator, no per-step overhead.
        return pl.pallas_call(
            _linear_single_kernel,
            out_shape=jax.ShapeDtypeStruct((B, N), jnp.float32),
            grid_spec=pltpu.PrefetchScalarGridSpec(
                num_scalar_prefetch=0,
                grid=(1,),
                in_specs=[
                    pl.BlockSpec((B, D), lambda k: (0, 0)),   # full x
                    pl.BlockSpec((D, N), lambda k: (0, 0)),   # full W.T
                    pl.BlockSpec((1, N), lambda k: (0, 0)),   # bias
                ],
                out_specs=pl.BlockSpec((B, N), lambda k: (0, 0)),
            ),
            compiler_params=pltpu.CompilerParams(
                dimension_semantics=("arbitrary",)
            ),
        )(x2d, wt, b2d)

    # Fallback for very large D / B: large K tiles, reduction axis is the only
    # (last) grid axis, accumulate into the resident output block.
    # TODO(synk): add a "parallel" B grid axis for v7x dual-TensorCore if B grows.
    tk = min(max_tk, ((D + 127) // 128) * 128)
    while tk > 512 and 4 * (2 * B * tk + 2 * tk * N + 2 * N + B * N) > vmem_budget_bytes:
        tk //= 2
    Kp = ((D + tk - 1) // tk) * tk
    if Kp != D:
        # Zero-pad only the K tail (zeros contribute nothing to the dot).
        x2d = jnp.pad(x2d, ((0, 0), (0, Kp - D)))
        wt = jnp.pad(wt, ((0, Kp - D), (0, 0)))

    return pl.pallas_call(
        _linear_ktiled_kernel,
        out_shape=jax.ShapeDtypeStruct((B, N), jnp.float32),
        grid_spec=pltpu.PrefetchScalarGridSpec(
            num_scalar_prefetch=0,
            grid=(Kp // tk,),
            in_specs=[
                pl.BlockSpec((B, tk), lambda k: (0, k)),   # x K-tile
                pl.BlockSpec((tk, N), lambda k: (k, 0)),   # W.T K-tile
                pl.BlockSpec((1, N), lambda k: (0, 0)),    # bias (resident)
            ],
            out_specs=pl.BlockSpec((B, N), lambda k: (0, 0)),
        ),
        compiler_params=pltpu.CompilerParams(
            dimension_semantics=("arbitrary",)
        ),
    )(x2d, wt, b2d)


if __name__ == "__main__":
    # Small shapes consistent with the module: B=2, C=3, H=W=16 -> input_dim=768
    B, C, H, W = 2, 3, 16, 16
    input_dim = C * H * W
    out_features = 2

    key = jax.random.PRNGKey(0)
    kx, kw, kb = jax.random.split(key, 3)

    x = jax.random.normal(kx, (B, C, H, W), dtype=jnp.float32)
    # Deterministic parameters (nn.Linear shapes: weight (2, D), bias (2,))
    weight = jax.random.normal(kw, (out_features, input_dim), dtype=jnp.float32) * 0.02
    bias = jax.random.normal(kb, (out_features,), dtype=jnp.float32) * 0.02

    y = logistic_model_forward(x, weight, bias)
    y = jax.block_until_ready(y)

    # Reference check against plain JAX (same math as torch's F.linear).
    y_ref = x.reshape(B, -1) @ weight.T + bias
    assert y.shape == (B, out_features)
    assert jnp.allclose(y, y_ref, atol=1e-4, rtol=1e-4), "mismatch vs reference"

    print("KERNEL_OK")
</pallas_src>

<mosaic_0001>
module attributes {stable_mosaic.version = 11 : i64} {
  func.func @_linear_single_kernel(%arg0: i32, %arg1: memref<2x768xf32, #tpu.memory_space<vmem>>, %arg2: memref<768x2xf32, #tpu.memory_space<vmem>>, %arg3: memref<1x2xf32, #tpu.memory_space<vmem>>, %arg4: memref<2x2xf32, #tpu.memory_space<vmem>>) attributes {dimension_semantics = [#tpu.dimension_semantics<arbitrary>], iteration_bounds = array<i64: 1>, scalar_prefetch = 0 : i64, scratch_operands = 0 : i64, tpu.core_type = #tpu.core_type<tc>, window_params = [{pipeline_mode = #tpu.pipeline_mode<synchronous>, transform_indices = @transform_0, window_bounds = array<i64: 2, 768>}, {pipeline_mode = #tpu.pipeline_mode<synchronous>, transform_indices = @transform_1, window_bounds = array<i64: 768, 2>}, {pipeline_mode = #tpu.pipeline_mode<synchronous>, transform_indices = @transform_2, window_bounds = array<i64: 1, 2>}, {pipeline_mode = #tpu.pipeline_mode<synchronous>, transform_indices = @transform_3, window_bounds = array<i64: 2, 2>}]} {
    %c0 = arith.constant 0 : index
    %c0_0 = arith.constant 0 : index
    %0 = vector.load %arg1[%c0, %c0_0] : memref<2x768xf32, #tpu.memory_space<vmem>>, vector<2x768xf32>
    %c0_1 = arith.constant 0 : index
    %c0_2 = arith.constant 0 : index
    %1 = vector.load %arg2[%c0_1, %c0_2] : memref<768x2xf32, #tpu.memory_space<vmem>>, vector<768x2xf32>
    %cst = arith.constant dense<0.000000e+00> : vector<2x2xf32>
    %2 = tpu.matmul %0, %1, %cst {dimension_numbers = #tpu.dot_dimension_numbers<[1], [0], [0], [1], [0, 0, 1, 1], [], []>} : vector<2x768xf32>, vector<768x2xf32>, vector<2x2xf32> -> vector<2x2xf32>
    %c0_3 = arith.constant 0 : index
    %c0_4 = arith.constant 0 : index
    %3 = vector.load %arg3[%c0_3, %c0_4] : memref<1x2xf32, #tpu.memory_space<vmem>>, vector<1x2xf32>
    %4 = vector.broadcast %3 : vector<1x2xf32> to vector<2x2xf32>
    %5 = arith.addf %2, %4 : vector<2x2xf32>
    %c0_5 = arith.constant 0 : index
    %c0_6 = arith.constant 0 : index
    %6 = vector.load %arg4[%c0_5, %c0_6] : memref<2x2xf32, #tpu.memory_space<vmem>>, vector<2x2xf32>
    tpu.vector_store %arg4[%c0_5, %c0_6], %5 {strides = array<i32>} : memref<2x2xf32, #tpu.memory_space<vmem>>, vector<2x2xf32>,
    return
  }
  func.func @transform_0(%arg0: i32) -> (i32, i32) {
    %c0_i32 = arith.constant 0 : i32
    %c0_i32_0 = arith.constant 0 : i32
    %c0_i32_1 = arith.constant 0 : i32
    return %c0_i32, %c0_i32_0 : i32, i32
  }
  func.func @transform_1(%arg0: i32) -> (i32, i32) {
    %c0_i32 = arith.constant 0 : i32
    %c0_i32_0 = arith.constant 0 : i32
    %c0_i32_1 = arith.constant 0 : i32
    return %c0_i32, %c0_i32_0 : i32, i32
  }
  func.func @transform_2(%arg0: i32) -> (i32, i32) {
    %c0_i32 = arith.constant 0 : i32
    %c0_i32_0 = arith.constant 0 : i32
    %c0_i32_1 = arith.constant 0 : i32
    return %c0_i32, %c0_i32_0 : i32, i32
  }
  func.func @transform_3(%arg0: i32) -> (i32, i32) {
    %c0_i32 = arith.constant 0 : i32
    %c0_i32_0 = arith.constant 0 : i32
    %c0_i32_1 = arith.constant 0 : i32
    return %c0_i32, %c0_i32_0 : i32, i32
  }
}

</mosaic_0001>

<bundles_post_ra>
// kernel: tpu_custom_call.1
= control target key start
LH: loop header
LB: loop body
LE: loop exit
PB: predicated region body
PF: predicated region fallthrough
CT: control target
= control target key end

     0   :  { %s621_s0 = inlined_call_operand.vmem [shape: f32[2,768], index: 0, kind: input, shape index: {}]   ;;  %s622_s1 = inlined_call_operand.vmem [shape: f32[768,2], index: 1, kind: input, shape index: {}]   ;;  %s623_s2 = inlined_call_operand.vmem [shape: f32[1,2], index: 2, kind: input, shape index: {}]   ;;  %s624_s3 = inlined_call_operand.hbm [shape: f32[2,2], index: 3, kind: output, shape index: {}]  }
   0x1   :  { %v32_v0 = vld [vmem:[%s622_s1 + $0x78] sm:$0xff]  ;;  %v31_v1 = vld [vmem:[%s622_s1 + $0x70] sm:$0xff]  ;;  %v30_v4 = vld [vmem:[%s622_s1 + $0x68] sm:$0xff] }
   0x2   :  { %v48_v2 = vld [vmem:[%s622_s1 + $0xf8] sm:$0xff]  ;;  %134 = vmatpush.msra.mxu0 %v32_v0  ;;  %v47_v3 = vld [vmem:[%s622_s1 + $0xf0] sm:$0xff]  ;;  %v46_v5 = vld [vmem:[%s622_s1 + $0xe8] sm:$0xff] }
   0x3   :  { %154 = vmatpush.msra.mxu1 %v48_v2  ;;  %v29_v6 = vld [vmem:[%s622_s1 + $0x60] sm:$0xff]  ;;  %v28_v8 = vld [vmem:[%s622_s1 + $0x58] sm:$0xff]  ;;  %v27_v10 = vld [vmem:[%s622_s1 + $0x50] sm:$0xff] }
   0x4   :  { %135 = vmatpush.msra.mxu0 %v31_v1  ;;  %v45_v7 = vld [vmem:[%s622_s1 + $0xe0] sm:$0xff]  ;;  %v44_v9 = vld [vmem:[%s622_s1 + $0xd8] sm:$0xff]  ;;  %v43_v12 = vld [vmem:[%s622_s1 + $0xd0] sm:$0xff] }
   0x5   :  { %155 = vmatpush.msra.mxu1 %v47_v3  ;;  %v64_v11 = vld [vmem:[%s622_s1 + $0x178] sm:$0xff]  ;;  %v63_v13 = vld [vmem:[%s622_s1 + $0x170] sm:$0xff]  ;;  %v62_v15 = vld [vmem:[%s622_s1 + $0x168] sm:$0xff] }
   0x6   :  { %136 = vmatpush.msra.mxu0 %v30_v4  ;;  %174 = vmatpush.msra.mxu2 %v64_v11  ;;  %v80_v14 = vld [vmem:[%s622_s1 + $0x1f8] sm:$0xff]  ;;  %v79_v16 = vld [vmem:[%s622_s1 + $0x1f0] sm:$0xff]  ;;  %v26_v17 = vld [vmem:[%s622_s1 + $0x48] sm:$0xff] }
   0x7   :  { %156 = vmatpush.msra.mxu1 %v46_v5  ;;  %v42_v18 = vld [vmem:[%s622_s1 + $0xc8] sm:$0xff]  ;;  %194 = vmatpush.msra.mxu3 %v80_v14  ;;  %v61_v19 = vld [vmem:[%s622_s1 + $0x160] sm:$0xff]  ;;  %v60_v23 = vld [vmem:[%s622_s1 + $0x158] sm:$0xff] }
   0x8   :  { %137 = vmatpush.msra.mxu0 %v29_v6  ;;  %175 = vmatpush.msra.mxu2 %v63_v13  ;;  %v78_v20 = vld [vmem:[%s622_s1 + $0x1e8] sm:$0xff]  ;;  %v25_v21 = vld [vmem:[%s622_s1 + $0x40] sm:$0xff]  ;;  %v24_v25 = vld [vmem:[%s622_s1 + $0x38] sm:$0xff] }
   0x9   :  { %157 = vmatpush.msra.mxu1 %v45_v7  ;;  %v41_v22 = vld [vmem:[%s622_s1 + $0xc0] sm:$0xff]  ;;  %195 = vmatpush.msra.mxu3 %v79_v16  ;;  %v40_v26 = vld [vmem:[%s622_s1 + $0xb8] sm:$0xff]  ;;  %v59_v27 = vld [vmem:[%s622_s1 + $0x150] sm:$0xff] }
   0xa   :  { %138 = vmatpush.msra.mxu0 %v28_v8  ;;  %176 = vmatpush.msra.mxu2 %v62_v15  ;;  %v77_v24 = vld [vmem:[%s622_s1 + $0x1e0] sm:$0xff]  ;;  %v76_v28 = vld [vmem:[%s622_s1 + $0x1d8] sm:$0xff]  ;;  %v23_v29 = vld [vmem:[%s622_s1 + $0x30] sm:$0xff] }
   0xb   :  { %158 = vmatpush.msra.mxu1 %v44_v9  ;;  %196 = vmatpush.msra.mxu3 %v78_v20  ;;  %v39_v30 = vld [vmem:[%s622_s1 + $0xb0] sm:$0xff]  ;;  %v58_v31 = vld [vmem:[%s622_s1 + $0x148] sm:$0xff]  ;;  %v57_v35 = vld [vmem:[%s622_s1 + $0x140] sm:$0xff] }
   0xc   :  { %139 = vmatpush.msra.mxu0 %v27_v10  ;;  %177 = vmatpush.msra.mxu2 %v61_v19  ;;  %v75_v32 = vld [vmem:[%s622_s1 + $0x1d0] sm:$0xff]  ;;  %v22_v33 = vld [vmem:[%s622_s1 + $0x28] sm:$0xff]  ;;  %v21_v37 = vld [vmem:[%s622_s1 + $0x20] sm:$0xff] }
   0xd   :  { %159 = vmatpush.msra.mxu1 %v43_v12  ;;  %197 = vmatpush.msra.mxu3 %v77_v24  ;;  %v38_v34 = vld [vmem:[%s622_s1 + $0xa8] sm:$0xff]  ;;  %v37_v38 = vld [vmem:[%s622_s1 + $0xa0] sm:$0xff]  ;;  %v56_v39 = vld [vmem:[%s622_s1 + $0x138] sm:$0xff] }
   0xe   :  { %140 = vmatpush.msra.mxu0 %v26_v17  ;;  %178 = vmatpush.msra.mxu2 %v60_v23  ;;  %v74_v36 = vld [vmem:[%s622_s1 + $0x1c8] sm:$0xff]  ;;  %v73_v40 = vld [vmem:[%s622_s1 + $0x1c0] sm:$0xff]  ;;  %v20_v41 = vld [vmem:[%s622_s1 + $0x18] sm:$0xff] }
   0xf   :  { %160 = vmatpush.msra.mxu1 %v42_v18  ;;  %198 = vmatpush.msra.mxu3 %v76_v28  ;;  %v36_v42 = vld [vmem:[%s622_s1 + $0x98] sm:$0xff]  ;;  %v55_v43 = vld [vmem:[%s622_s1 + $0x130] sm:$0xff]  ;;  %v54_v47 = vld [vmem:[%s622_s1 + $0x128] sm:$0xff] }
  0x10   :  { %141 = vmatpush.msra.mxu0 %v25_v21  ;;  %179 = vmatpush.msra.mxu2 %v59_v27  ;;  %v72_v44 = vld [vmem:[%s622_s1 + $0x1b8] sm:$0xff]  ;;  %v19_v45 = vld [vmem:[%s622_s1 + $0x10] sm:$0xff]  ;;  %v18_v49 = vld [vmem:[%s622_s1 + $0x8] sm:$0xff] }
  0x11   :  { %161 = vmatpush.msra.mxu1 %v41_v22  ;;  %199 = vmatpush.msra.mxu3 %v75_v32  ;;  %v35_v46 = vld [vmem:[%s622_s1 + $0x90] sm:$0xff]  ;;  %v34_v50 = vld [vmem:[%s622_s1 + $0x88] sm:$0xff]  ;;  %v53_v51 = vld [vmem:[%s622_s1 + $0x120] sm:$0xff] }
  0x12   :  { %142 = vmatpush.msra.mxu0 %v24_v25  ;;  %180 = vmatpush.msra.mxu2 %v58_v31  ;;  %v71_v48 = vld [vmem:[%s622_s1 + $0x1b0] sm:$0xff]  ;;  %v70_v52 = vld [vmem:[%s622_s1 + $0x1a8] sm:$0xff]  ;;  %v17_v53 = vld [vmem:[%s622_s1] sm:$0xff] }
  0x13   :  { %162 = vmatpush.msra.mxu1 %v40_v26  ;;  %200 = vmatpush.msra.mxu3 %v74_v36  ;;  %v33_v54 = vld [vmem:[%s622_s1 + $0x80] sm:$0xff]  ;;  %v96_v56 = vld [vmem:[%s622_s1 + $0x278] sm:$0xff]  ;;  %v95_v60 = vld [vmem:[%s622_s1 + $0x270] sm:$0xff] }
  0x14   :  { %143 = vmatpush.msra.mxu0 %v23_v29  ;;  %181 = vmatpush.msra.mxu2 %v57_v35  ;;  %v15_v55 = vld [vmem:[%s621_s0] sm:$0xff]  ;;  %v112_v57 = vld [vmem:[%s622_s1 + $0x2f8] sm:$0xff]  ;;  %v111_v61 = vld [vmem:[%s622_s1 + $0x2f0] sm:$0xff] }
  0x15   :  { %163 = vmatpush.msra.mxu1 %v39_v30  ;;  %201 = vmatpush.msra.mxu3 %v73_v40  ;;  %119 = vst [vmem:[#allocation1] ss:$4 sm:$0xff] %v15_v55  ;;  %v52_v58 = vld [vmem:[%s622_s1 + $0x118] sm:$0xff]  ;;  %v69_v59 = vld [vmem:[%s622_s1 + $0x1a0] sm:$0xff]  ;;  %v51_v62 = vld [vmem:[%s622_s1 + $0x110] sm:$0xff] }
  0x16   :  { %144 = vmatpush.msra.mxu0 %v22_v33  ;;  %182 = vmatpush.msra.mxu2 %v56_v39  ;;  %v68_v63 = vld [vmem:[%s622_s1 + $0x198] sm:$0xff]  ;;  %v16_v0 = vld [vmem:[%s621_s0 + $0x8] sm:$0xf] }
  0x17   :  { %164 = vmatpush.msra.mxu1 %v38_v34  ;;  %202 = vmatpush.msra.mxu3 %v72_v44  ;;  %v94_v1 = vld [vmem:[%s622_s1 + $0x268] sm:$0xff]  ;;  %121 = vst [vmem:[#allocation1 + $0x20] ss:$4 sm:$0xff] %v16_v0 }
  0x18   :  { %145 = vmatpush.msra.mxu0 %v21_v37  ;;  %183 = vmatpush.msra.mxu2 %v55_v43  ;;  %v110_v2 = vld [vmem:[%s622_s1 + $0x2e8] sm:$0xff] }
  0x19   :  { %165 = vmatpush.msra.mxu1 %v37_v38  ;;  %203 = vmatpush.msra.mxu3 %v71_v48 }
  0x1a   :  { %146 = vmatpush.msra.mxu0 %v20_v41  ;;  %184 = vmatpush.msra.mxu2 %v54_v47 }
  0x1b   :  { %166 = vmatpush.msra.mxu1 %v36_v42  ;;  %204 = vmatpush.msra.mxu3 %v70_v52 }
  0x1c   :  { %147 = vmatpush.msra.mxu0 %v19_v45  ;;  %185 = vmatpush.msra.mxu2 %v53_v51 }
  0x1d   :  { %167 = vmatpush.msra.mxu1 %v35_v46  ;;  %205 = vmatpush.msra.mxu3 %v69_v59 }
  0x1e   :  { %148 = vmatpush.msra.mxu0 %v18_v49  ;;  %186 = vmatpush.msra.mxu2 %v52_v58 }
  0x1f   :  { %168 = vmatpush.msra.mxu1 %v34_v50 }
  0x20   :  { %149 = vmatpush.msra.mxu0 %v17_v53 }
  0x21   :  { %169 = vmatpush.msra.mxu1 %v33_v54 }
  0x22   :  { %214 = vmatpush.msrb.mxu0 %v96_v56 }
  0x23   :  { %234 = vmatpush.msrb.mxu1 %v112_v57 }
  0x24   :  { %8 = vsyncpa [#allocation3], 0  ;;  %215 = vmatpush.msrb.mxu0 %v95_v60  ;;  %v50_v3 = vld [vmem:[%s622_s1 + $0x108] sm:$0xff]  ;;  %v67_v4 = vld [vmem:[%s622_s1 + $0x190] sm:$0xff]  ;;  %187 = vmatpush.msra.mxu2 %v51_v62  ;;  %s263_s21 = sshll.u32 %s624_s3, 4  ;;  %vm254_vm0 = vcmask 9216   ;;  %s264_s21 = int_to_ptr.hbm [resolvable:$true] %s263_s21 }
  0x25   :  { %235 = vmatpush.msrb.mxu1 %v111_v61  ;;  %v93_v5 = vld [vmem:[%s622_s1 + $0x260] sm:$0xff]  ;;  %206 = vmatpush.msra.mxu3 %v68_v63  ;;  %v66_v8 = vld [vmem:[%s622_s1 + $0x188] sm:$0xff]  ;;  %v92_v9 = vld [vmem:[%s622_s1 + $0x258] sm:$0xff] }
  0x26   :  { %v109_v6 = vld [vmem:[%s622_s1 + $0x2e0] sm:$0xff]  ;;  %216 = vmatpush.msrb.mxu0 %v94_v1  ;;  %v108_v10 = vld [vmem:[%s622_s1 + $0x2d8] sm:$0xff]  ;;  %188 = vmatpush.msra.mxu2 %v50_v3  ;;  %v124_v11 = vld.sshfl [vmem:[#allocation1 + $0x10] sm:$0xff pattern:$0x73625140] }
  0x27   :  { %236 = vmatpush.msrb.mxu1 %v110_v2  ;;  %v49_v7 = vld [vmem:[%s622_s1 + $0x100] sm:$0xff]  ;;  %207 = vmatpush.msra.mxu3 %v67_v4  ;;  %v91_v13 = vld [vmem:[%s622_s1 + $0x250] sm:$0xff]  ;;  %v125_v16 = vld.sshfl [vmem:[#allocation1 + $0x18] sm:$0xff pattern:$0x73625140] }
  0x28   :  { %217 = vmatpush.msrb.mxu0 %v93_v5  ;;  %v65_v12 = vld [vmem:[%s622_s1 + $0x180] sm:$0xff]  ;;  %v107_v14 = vld [vmem:[%s622_s1 + $0x2d0] sm:$0xff]  ;;  %189 = vmatpush.msra.mxu2 %v49_v7  ;;  %v90_v17 = vld [vmem:[%s622_s1 + $0x248] sm:$0xff] }
  0x29   :  { %237 = vmatpush.msrb.mxu1 %v109_v6  ;;  %208 = vmatpush.msra.mxu3 %v66_v8  ;;  %v122_v15 = vld.sshfl [vmem:[#allocation1] sm:$0xff pattern:$0x73625140]  ;;  %v106_v18 = vld [vmem:[%s622_s1 + $0x2c8] sm:$0xff]  ;;  %v88_v22 = vld [vmem:[%s622_s1 + $0x238] sm:$0xff] }
  0x2a   :  { %218 = vmatpush.msrb.mxu0 %v92_v9  ;;  %190 = vmatmul.f32.vlgmr.msra.gmra.mxu2 %v124_v11  ;;  %v123_v19 = vld.sshfl [vmem:[#allocation1 + $0x8] sm:$0xff pattern:$0x73625140]  ;;  %v89_v20 = vld [vmem:[%s622_s1 + $0x240] sm:$0xff]  ;;  %v104_v23 = vld [vmem:[%s622_s1 + $0x2b8] sm:$0xff] }
  0x2b   :  { %238 = vmatpush.msrb.mxu1 %v108_v10  ;;  %209 = vmatpush.msra.mxu3 %v65_v12  ;;  %v105_v21 = vld [vmem:[%s622_s1 + $0x2c0] sm:$0xff]  ;;  %v87_v24 = vld [vmem:[%s622_s1 + $0x230] sm:$0xff]  ;;  %v86_v26 = vld [vmem:[%s622_s1 + $0x228] sm:$0xff] }
  0x2c   :  { %219 = vmatpush.msrb.mxu0 %v91_v13  ;;  %210 = vmatmul.f32.vlgmr.msra.gmra.mxu3 %v125_v16  ;;  %v103_v25 = vld [vmem:[%s622_s1 + $0x2b0] sm:$0xff]  ;;  %v102_v27 = vld [vmem:[%s622_s1 + $0x2a8] sm:$0xff]  ;;  %v85_v28 = vld [vmem:[%s622_s1 + $0x220] sm:$0xff] }
  0x2d   :  { %239 = vmatpush.msrb.mxu1 %v107_v14  ;;  %150 = vmatmul.f32.vlgmr.msra.gmra.mxu0 %v122_v15  ;;  %v101_v29 = vld [vmem:[%s622_s1 + $0x2a0] sm:$0xff]  ;;  %v84_v30 = vld [vmem:[%s622_s1 + $0x218] sm:$0xff]  ;;  %v83_v32 = vld [vmem:[%s622_s1 + $0x210] sm:$0xff] }
  0x2e   :  { %220 = vmatpush.msrb.mxu0 %v90_v17  ;;  %170 = vmatmul.f32.vlgmr.msra.gmra.mxu1 %v123_v19  ;;  %v100_v31 = vld [vmem:[%s622_s1 + $0x298] sm:$0xff]  ;;  %v99_v33 = vld [vmem:[%s622_s1 + $0x290] sm:$0xff]  ;;  %v82_v34 = vld [vmem:[%s622_s1 + $0x208] sm:$0xff] }
  0x2f   :  { %240 = vmatpush.msrb.mxu1 %v106_v18  ;;  %v98_v35 = vld [vmem:[%s622_s1 + $0x288] sm:$0xff]  ;;  %v81_v36 = vld [vmem:[%s622_s1 + $0x200] sm:$0xff] }
  0x30   :  { %221 = vmatpush.msrb.mxu0 %v89_v20  ;;  %v97_v37 = vld [vmem:[%s622_s1 + $0x280] sm:$0xff]  ;;  %v127_v39 = vld.sshfl [vmem:[#allocation1 + $0x28] sm:$0xff pattern:$0x73625140]  ;;  %s300_s1 = smov [#allocation2]  }
  0x31   :  { %241 = vmatpush.msrb.mxu1 %v105_v21  ;;  %v126_v38 = vld.sshfl [vmem:[#allocation1 + $0x20] sm:$0xff pattern:$0x73625140]  ;;  %s261_s18 = sshll.u32 %s300_s1, 4  ;;  %s262_s18 = int_to_ptr.vmem [resolvable:$true] %s261_s18 }
  0x32   :  { %222 = vmatpush.msrb.mxu0 %v88_v22  ;;  %v273_v40 = vld [vmem:[%s623_s2] ss:$0 sm:$0xff] }
  0x33   :  { %242 = vmatpush.msrb.mxu1 %v104_v23 }
  0x34   :  { %223 = vmatpush.msrb.mxu0 %v87_v24 }
  0x35   :  { %243 = vmatpush.msrb.mxu1 %v103_v25 }
  0x36   :  { %224 = vmatpush.msrb.mxu0 %v86_v26 }
  0x37   :  { %244 = vmatpush.msrb.mxu1 %v102_v27 }
  0x38   :  { %225 = vmatpush.msrb.mxu0 %v85_v28 }
  0x39   :  { %245 = vmatpush.msrb.mxu1 %v101_v29 }
  0x3a   :  { %226 = vmatpush.msrb.mxu0 %v84_v30 }
  0x3b   :  { %246 = vmatpush.msrb.mxu1 %v100_v31 }
  0x3c   :  { %227 = vmatpush.msrb.mxu0 %v83_v32 }
  0x3d   :  { %247 = vmatpush.msrb.mxu1 %v99_v33 }
  0x3e   :  { %228 = vmatpush.msrb.mxu0 %v82_v34 }
  0x3f   :  { %248 = vmatpush.msrb.mxu1 %v98_v35 }
  0x40   :  { %229 = vmatpush.msrb.mxu0 %v81_v36 }
  0x41   :  { %249 = vmatpush.msrb.mxu1 %v97_v37  ;;  %230 = vmatmul.f32.vlgmr.msrb.gmra.mxu0 %v126_v38 }
  0x42   :  { %250 = vmatmul.f32.vlgmr.msrb.gmra.mxu1 %v127_v39 }
  0xaa   :  { %v151_v41 = vpop.f32.mrf.mxu0 }
  0xab   :  { %v152_v42 = vadd.f32 %v273_v40, %v151_v41  ;;  %v171_v43 = vpop.f32.mrf.mxu1 }
  0xad   :  { %v172_v44 = vadd.f32 %v171_v43, %v152_v42  ;;  %v191_v45 = vpop.f32.mrf.mxu2 }
  0xaf   :  { %v192_v46 = vadd.f32 %v191_v45, %v172_v44  ;;  %v211_v47 = vpop.f32.mrf.mxu3 }
  0xb1   :  { %v212_v48 = vadd.f32 %v211_v47, %v192_v46 }
  0xbe   :  { %v231_v49 = vpop.f32.mrf.mxu0 }
  0xbf   :  { %v251_v50 = vpop.f32.mrf.mxu1  ;;  %v232_v51 = vadd.f32 %v231_v49, %v212_v48 }
  0xc1   :  { %v252_v52 = vadd.f32 %v251_v50, %v232_v51 }
  0xc3   :  { %255 = vst.msk [vmem:[#allocation2] sm:$0x3] %vm254_vm0, %v252_v52 }
  0xc4   :  { %266 = dma.vmem_to_hbm [thread:$0]  %s262_s18, 32, %s264_s21, [#allocation3]  }
  0xc5   :  { %298 = dma.done.wait [#allocation3], 32  }
  0xc6   :  { %299 = vsyncadd [#allocation3], 4294967264 }
  0xc7   :  { %271 = vsyncpa [#allocation3], 1 }

</bundles_post_ra>
